<compile_context>
chip_gen: v5e
topology: v5e:2x2
jax: 0.10.0
libtpu: 0.0.40
codegen_flags: <defaults>
</compile_context>

<pallas_src>
import functools

import jax
import jax.numpy as jnp
from jax import lax
from jax.experimental import pallas as pl
from jax.experimental.pallas import tpu as pltpu


def _round_up(x, m):
    return (x + m - 1) // m * m


# ----------------------------------------------------------------------------
# Block index maps (clamped at array edges; garbage is masked in-kernel)
# ----------------------------------------------------------------------------
def _idx_main(i, j, *, last):
    return (i, 0, jnp.minimum(j, last))


def _idx_left(i, j, *, bpt):
    return (i, 0, jnp.maximum(j * bpt - 1, 0))


def _idx_right(i, j, *, bpt, last):
    return (i, 0, jnp.minimum((j + 1) * bpt, last))


def _idx_out(i, j):
    return (i, 0, j)


def _idx_whole(i, j):
    return (0, 0)


# ----------------------------------------------------------------------------
# Pallas kernel: fused Conv1d (+ bias + optional LeakyReLU) on one lane tile
# ----------------------------------------------------------------------------
def _conv1d_kernel(*refs, stride, ksize, padding, slope, phase_lens):
    """refs = [main_0, left_0, right_0, ..., main_{s-1}, left_{s-1}, right_{s-1},
               w_fold, bias, out]

    main_r  : (1, C_in, T)   bf16 block of stride-phase r
    left_r  : (1, C_in, 128) bf16 block just left of main_r (clamped at edges)
    right_r : (1, C_in, 128) bf16 block just right of main_r (clamped at edges)
    w_fold  : (C_out, K*C_in) bf16 tap-folded block-diagonal weights
    bias    : (C_out, 1) f32
    out     : (1, C_out, T) bf16
    """
    n_in = 3 * stride
    x_refs = refs[:n_in]
    w_ref, b_ref, o_ref = refs[n_in], refs[n_in + 1], refs[n_in + 2]
    t = o_ref.shape[2]
    halo = x_refs[1].shape[2]                     # 128
    j = pl.program_id(1)

    # window column c of phase r  <->  phase-r position  j*T - halo + c
    pos = j * t - halo + lax.broadcasted_iota(jnp.int32, (1, t + 2 * halo), 1)

    windows = []
    for r in range(stride):
        main = x_refs[3 * r][0]                   # (C_in, T)   bf16
        left = x_refs[3 * r + 1][0]               # (C_in, 128) bf16
        right = x_refs[3 * r + 2][0]              # (C_in, 128) bf16
        win = jnp.concatenate([left, main, right], axis=-1)   # lane-aligned widths
        valid = (pos >= 0) & (pos < phase_lens[r])             # conv zero padding,
        win = jnp.where(valid, win, jnp.zeros_like(win))       # clamped halos, tails
        windows.append(win)

    # Fold the K taps into one (K*C_in, T) bf16 MXU operand.
    rows = []
    for k in range(ksize):
        r = (k - padding) % stride
        d = (k - padding - r) // stride           # |d| <= (K-1)//stride <= 128
        rows.append(windows[r][:, halo + d: halo + d + t])
    folded = rows[0] if len(rows) == 1 else jnp.concatenate(rows, axis=0)

    acc = jnp.dot(w_ref[...], folded, preferred_element_type=jnp.float32)
    acc = acc + b_ref[...]                        # (C_out, 1) broadcast
    if slope is not None:                         # fused LeakyReLU
        acc = jnp.where(acc >= 0.0, acc, acc * slope)
    o_ref[0] = acc.astype(o_ref.dtype)


# ----------------------------------------------------------------------------
# Conv1d wrapper: tiling over (batch, output-lane tiles)
# ----------------------------------------------------------------------------
def pallas_conv1d(x, w_fold, bias, *, stride, ksize, padding, slope=None,
                  tile_lanes=8192, out_dtype=jnp.bfloat16):
    """x: (N, C_in, L) bf16; w_fold: (C_out, K*C_in) bf16; bias: (C_out, 1) f32."""
    n, c_in, l_in = x.shape
    c_out = w_fold.shape[0]
    l_out = (l_in + 2 * padding - ksize) // stride + 1

    # True per-phase lengths (before any padding) -> in-kernel masks.
    phase_lens = tuple((l_in - r + stride - 1) // stride for r in range(stride))
    min_phase = min(phase_lens)

    small = min_phase < 128
    if small:
        # tiny inputs: pad so every stride phase is exactly one 128-lane block.
        x = jnp.pad(x, ((0, 0), (0, 0), (0, stride * 128 - l_in)))
        t, out_lanes = 128, 128
    else:
        cap = (min(l_out, min_phase) // 128) * 128
        t = min(_round_up(tile_lanes, 128), cap)
        out_lanes = l_out

    num_tiles = pl.cdiv(out_lanes, t)
    if not small and n * num_tiles < 2 and l_out >= 256:
        # keep both v7x TensorCores fed when batch==1 and one tile would suffice.
        t = max(128, (pl.cdiv(l_out, 2) // 128) * 128)
        num_tiles = pl.cdiv(out_lanes, t)
    bpt = t // 128                                # 128-lane blocks per main tile

    # Stride-phase views; conv zero padding is done in-kernel (no jnp.pad here).
    phases = [x] if stride == 1 else [x[:, :, r::stride] for r in range(stride)]

    inputs, in_specs = [], []
    for r in range(stride):
        lr = phases[r].shape[-1]
        main_last = max(pl.cdiv(lr, t) - 1, 0)
        halo_last = max(pl.cdiv(lr, 128) - 1, 0)
        inputs += [phases[r], phases[r], phases[r]]
        in_specs += [
            pl.BlockSpec((1, c_in, t), functools.partial(_idx_main, last=main_last)),
            pl.BlockSpec((1, c_in, 128), functools.partial(_idx_left, bpt=bpt)),
            pl.BlockSpec((1, c_in, 128),
                         functools.partial(_idx_right, bpt=bpt, last=halo_last)),
        ]
    inputs += [w_fold, bias]
    in_specs += [pl.BlockSpec(w_fold.shape, _idx_whole),
                 pl.BlockSpec(bias.shape, _idx_whole)]

    flops = 2 * n * l_out * ksize * c_in * c_out
    bytes_accessed = int(
        n * num_tiles * stride * c_in * (t + 256) * 2       # activations incl. halos
        + n * num_tiles * (w_fold.size * 2 + bias.size * 4)
        + n * c_out * out_lanes * 2)

    out = pl.pallas_call(
        functools.partial(_conv1d_kernel, stride=stride, ksize=ksize,
                          padding=padding, slope=slope, phase_lens=phase_lens),
        out_shape=jax.ShapeDtypeStruct((n, c_out, out_lanes), out_dtype),
        grid=(n, num_tiles),
        in_specs=in_specs,
        out_specs=pl.BlockSpec((1, c_out, t), _idx_out),
        compiler_params=pltpu.CompilerParams(
            dimension_semantics=("parallel", "parallel"),
            vmem_limit_bytes=32 * 1024 * 1024),
        cost_estimate=pl.CostEstimate(flops=flops, transcendentals=0,
                                      bytes_accessed=bytes_accessed),
    )(*inputs)
    return out[:, :, :l_out] if small else out


# ----------------------------------------------------------------------------
# weight_norm / spectral_norm folding + folded block-diagonal weights (init-time)
# ----------------------------------------------------------------------------
def weight_norm_effective(v, g):
    norm = jnp.sqrt(jnp.sum(v * v, axis=(1, 2), keepdims=True))
    return g * v / norm


def spectral_norm_effective(w, u, n_power_iterations=1, eps=1e-12):
    # TODO(synk): PyTorch's spectral_norm updates its `u` buffer every forward;
    # here one power iteration is folded at parameter-setup time (eval parity only).
    o = w.shape[0]
    w_mat = w.reshape(o, -1)
    v = None
    for _ in range(n_power_iterations):
        v = w_mat.T @ u
        v = v / (jnp.linalg.norm(v) + eps)
        u = w_mat @ v
        u = u / (jnp.linalg.norm(u) + eps)
    sigma = u @ (w_mat @ v)
    return w / sigma


def _build_folded_weights(w, groups, c_in_total):
    """w: (C_out, C_in/groups, K) -> (C_out, K*C_in_total), group block-diagonal,
    column order = (tap k major, channel minor), matching the kernel's folded rows."""
    c_out, c_g, ksize = w.shape
    o_g = c_out // groups
    wf = jnp.zeros((c_out, ksize, c_in_total), jnp.float32)
    for g in range(groups):
        blk = jnp.transpose(w[g * o_g:(g + 1) * o_g], (0, 2, 1))    # (Og, K, Cg)
        wf = wf.at[g * o_g:(g + 1) * o_g, :, g * c_g:(g + 1) * c_g].set(blk)
    return wf.reshape(c_out, ksize * c_in_total)


# ----------------------------------------------------------------------------
# Model config, parameter init, forward pass (semantics of ScaleDiscriminator)
# ----------------------------------------------------------------------------
class ModelConfig:
    msd_sublayer_channels = (4, 8, 8, 1)
    msd_sublayer_kernels = (5, 5, 5, 3)
    msd_sublayer_strides = (1, 2, 2, 1)
    msd_sublayer_groups = (1, 2, 2, 1)
    relu_slope = 0.1


def init_scale_discriminator(key, config, norm_fn="weight_norm"):
    layers = []
    last_c = 1
    for c, k, s, g in zip(config.msd_sublayer_channels,
                          config.msd_sublayer_kernels,
                          config.msd_sublayer_strides,
                          config.msd_sublayer_groups):
        key, wk, bk, uk = jax.random.split(key, 4)
        w = 0.1 * jax.random.normal(wk, (c, last_c // g, k), jnp.float32)
        b = 0.01 * jax.random.normal(bk, (c,), jnp.float32)
        if norm_fn == "spectral_norm":
            u = jax.random.normal(uk, (c,), jnp.float32)
            w_eff = spectral_norm_effective(w, u)
        else:  # weight_norm with g initialized to ||v|| (PyTorch init)
            gg = jnp.sqrt(jnp.sum(w * w, axis=(1, 2), keepdims=True))
            w_eff = weight_norm_effective(w, gg)
        layers.append(dict(
            w_fold=_build_folded_weights(w_eff, g, last_c).astype(jnp.bfloat16),
            bias=b.reshape(c, 1).astype(jnp.float32),
            stride=s, ksize=k, padding=(k - 1) // 2))
        last_c = c
    return layers


def scale_discriminator_forward(layers, x, relu_slope):
    # x: (N, 1, L).  PyTorch layer list = [conv0, lrelu0, conv1, lrelu1, ..., conv_last];
    # intermediates = every post-LeakyReLU output plus the final conv output, which is
    # exactly each fused conv's output here.
    x = x.astype(jnp.bfloat16)
    intermediate = []
    n_convs = len(layers)
    for idx, lyr in enumerate(layers):
        slope = None if idx + 1 == n_convs else relu_slope
        x = pallas_conv1d(x, lyr["w_fold"], lyr["bias"], stride=lyr["stride"],
                          ksize=lyr["ksize"], padding=lyr["padding"], slope=slope)
        intermediate.append(x)
    pred = x.reshape(x.shape[0], -1)   # nn.Flatten()
    return pred, intermediate


# Pure-JAX reference (mirrors the bf16 storage between layers) for self-check.
def _reference_forward(layers, x, relu_slope):
    x = x.astype(jnp.bfloat16)
    feats = []
    n_convs = len(layers)
    for idx, lyr in enumerate(layers):
        c_out, kc = lyr["w_fold"].shape
        k = lyr["ksize"]
        c_in = kc // k
        w = lyr["w_fold"].astype(jnp.float32).reshape(c_out, k, c_in)
        w = jnp.transpose(w, (0, 2, 1))                                # (O, I, K)
        y = lax.conv_general_dilated(
            x.astype(jnp.float32), w, window_strides=(lyr["stride"],),
            padding=[(lyr["padding"], lyr["padding"])],
            dimension_numbers=("NCH", "OIH", "NCH"),
            precision=lax.Precision.HIGHEST)
        y = y + lyr["bias"][None]
        if idx + 1 < n_convs:
            y = jnp.where(y >= 0.0, y, relu_slope * y)
        y = y.astype(jnp.bfloat16)
        feats.append(y)
        x = y
    return x.reshape(x.shape[0], -1), feats


if __name__ == "__main__":
    cfg = ModelConfig()
    key = jax.random.PRNGKey(0)
    pkey, xkey, xkey2 = jax.random.split(key, 3)

    # ScaleDiscriminator(norm_fn=weight_norm, config)
    params = init_scale_discriminator(pkey, cfg, norm_fn="weight_norm")

    # Main path: batch=2, 1 channel, waveform length 700 (exercises both strides,
    # grouped convs, partial lane tiles, halo clamping + masking).
    x = jax.random.normal(xkey, (2, 1, 700), jnp.float32)
    pred, feats = scale_discriminator_forward(params, x, cfg.relu_slope)
    jax.block_until_ready((pred, feats))

    ref_pred, ref_feats = _reference_forward(params, x, cfg.relu_slope)
    for a, b in zip(feats + [pred], ref_feats + [ref_pred]):
        assert a.shape == b.shape, (a.shape, b.shape)
        assert jnp.allclose(a.astype(jnp.float32), b.astype(jnp.float32),
                            atol=2e-2, rtol=2e-2), "mismatch vs reference"

    # Small-input fallback path (length 64).
    x2 = jax.random.normal(xkey2, (2, 1, 64), jnp.float32)
    pred2, feats2 = scale_discriminator_forward(params, x2, cfg.relu_slope)
    jax.block_until_ready((pred2, feats2))

    ref_pred2, ref_feats2 = _reference_forward(params, x2, cfg.relu_slope)
    for a, b in zip(feats2 + [pred2], ref_feats2 + [ref_pred2]):
        assert a.shape == b.shape, (a.shape, b.shape)
        assert jnp.allclose(a.astype(jnp.float32), b.astype(jnp.float32),
                            atol=2e-2, rtol=2e-2), "mismatch vs reference (small)"

    print("KERNEL_OK")
</pallas_src>

<mosaic_0001>
module attributes {stable_mosaic.version = 11 : i64} {
  func.func @_conv1d_kernel(%arg0: i32, %arg1: i32, %arg2: memref<1x1x640xbf16, #tpu.memory_space<vmem>>, %arg3: memref<1x1x128xbf16, #tpu.memory_space<vmem>>, %arg4: memref<1x1x128xbf16, #tpu.memory_space<vmem>>, %arg5: memref<4x5xbf16, #tpu.memory_space<vmem>>, %arg6: memref<4x1xf32, #tpu.memory_space<vmem>>, %arg7: memref<1x4x640xbf16, #tpu.memory_space<vmem>>) attributes {dimension_semantics = [#tpu.dimension_semantics<parallel>, #tpu.dimension_semantics<parallel>], iteration_bounds = array<i64: 2, 2>, scalar_prefetch = 0 : i64, scratch_operands = 0 : i64, tpu.core_type = #tpu.core_type<tc>, window_params = [{transform_indices = @transform_0, window_bounds = array<i64: 1, 1, 640>}, {transform_indices = @transform_1, window_bounds = array<i64: 1, 1, 128>}, {transform_indices = @transform_2, window_bounds = array<i64: 1, 1, 128>}, {pipeline_mode = #tpu.pipeline_mode<synchronous>, transform_indices = @transform_3, window_bounds = array<i64: 4, 5>}, {pipeline_mode = #tpu.pipeline_mode<synchronous>, transform_indices = @transform_4, window_bounds = array<i64: 4, 1>}, {transform_indices = @transform_5, window_bounds = array<i64: 1, 4, 640>}]} {
    %c640_i32 = arith.constant 640 : i32
    %0 = arith.muli %arg1, %c640_i32 : i32
    %c128_i32 = arith.constant 128 : i32
    %1 = arith.subi %0, %c128_i32 : i32
    %2 = tpu.iota {dimensions = array<i32: 1>} : vector<1x896xi32>
    %3 = vector.broadcast %1 : i32 to vector<1x896xi32>
    %4 = arith.addi %3, %2 : vector<1x896xi32>
    %c0 = arith.constant 0 : index
    %c0_0 = arith.constant 0 : index
    %c0_1 = arith.constant 0 : index
    %5 = vector.load %arg2[%c0, %c0_0, %c0_1] : memref<1x1x640xbf16, #tpu.memory_space<vmem>>, vector<1x1x640xbf16>
    %6 = vector.shape_cast %5 : vector<1x1x640xbf16> to vector<1x640xbf16>
    %c0_2 = arith.constant 0 : index
    %c0_3 = arith.constant 0 : index
    %c0_4 = arith.constant 0 : index
    %7 = vector.load %arg3[%c0_2, %c0_3, %c0_4] : memref<1x1x128xbf16, #tpu.memory_space<vmem>>, vector<1x1x128xbf16>
    %8 = vector.shape_cast %7 : vector<1x1x128xbf16> to vector<1x128xbf16>
    %c0_5 = arith.constant 0 : index
    %c0_6 = arith.constant 0 : index
    %c0_7 = arith.constant 0 : index
    %9 = vector.load %arg4[%c0_5, %c0_6, %c0_7] : memref<1x1x128xbf16, #tpu.memory_space<vmem>>, vector<1x1x128xbf16>
    %10 = vector.shape_cast %9 : vector<1x1x128xbf16> to vector<1x128xbf16>
    %11 = tpu.concatenate %8, %6, %10 in 1 : vector<1x128xbf16>, vector<1x640xbf16>, vector<1x128xbf16> -> vector<1x896xbf16>
    %c0_i32 = arith.constant 0 : i32
    %12 = vector.broadcast %c0_i32 : i32 to vector<1x896xi32>
    %13 = arith.cmpi sge, %4, %12 : vector<1x896xi32>
    %c700_i32 = arith.constant 700 : i32
    %14 = vector.broadcast %c700_i32 : i32 to vector<1x896xi32>
    %15 = arith.cmpi slt, %4, %14 : vector<1x896xi32>
    %16 = arith.andi %13, %15 : vector<1x896xi1>
    %cst = arith.constant 0.000000e+00 : bf16
    %17 = vector.broadcast %cst : bf16 to vector<1x896xbf16>
    %18 = arith.select %16, %11, %17 : vector<1x896xi1>, vector<1x896xbf16>
    %19 = vector.extract_strided_slice %18 {offsets = [0, 126], sizes = [1, 640], strides = [1, 1]} : vector<1x896xbf16> to vector<1x640xbf16>
    %20 = vector.extract_strided_slice %18 {offsets = [0, 127], sizes = [1, 640], strides = [1, 1]} : vector<1x896xbf16> to vector<1x640xbf16>
    %21 = vector.extract_strided_slice %18 {offsets = [0, 128], sizes = [1, 640], strides = [1, 1]} : vector<1x896xbf16> to vector<1x640xbf16>
    %22 = vector.extract_strided_slice %18 {offsets = [0, 129], sizes = [1, 640], strides = [1, 1]} : vector<1x896xbf16> to vector<1x640xbf16>
    %23 = vector.extract_strided_slice %18 {offsets = [0, 130], sizes = [1, 640], strides = [1, 1]} : vector<1x896xbf16> to vector<1x640xbf16>
    %24 = tpu.concatenate %19, %20, %21, %22, %23 in 0 : vector<1x640xbf16>, vector<1x640xbf16>, vector<1x640xbf16>, vector<1x640xbf16>, vector<1x640xbf16> -> vector<5x640xbf16>
    %c0_8 = arith.constant 0 : index
    %c0_9 = arith.constant 0 : index
    %25 = vector.load %arg5[%c0_8, %c0_9] : memref<4x5xbf16, #tpu.memory_space<vmem>>, vector<4x5xbf16>
    %cst_10 = arith.constant dense<0.000000e+00> : vector<4x640xf32>
    %26 = tpu.matmul %25, %24, %cst_10 {dimension_numbers = #tpu.dot_dimension_numbers<[1], [0], [0], [1], [0, 0, 1, 1], [], []>} : vector<4x5xbf16>, vector<5x640xbf16>, vector<4x640xf32> -> vector<4x640xf32>
    %c0_11 = arith.constant 0 : index
    %c0_12 = arith.constant 0 : index
    %27 = vector.load %arg6[%c0_11, %c0_12] : memref<4x1xf32, #tpu.memory_space<vmem>>, vector<4x1xf32>
    %28 = vector.broadcast %27 : vector<4x1xf32> to vector<4x640xf32>
    %29 = arith.addf %26, %28 : vector<4x640xf32>
    %cst_13 = arith.constant 0.000000e+00 : f32
    %30 = vector.broadcast %cst_13 : f32 to vector<4x640xf32>
    %31 = arith.cmpf oge, %29, %30 : vector<4x640xf32>
    %cst_14 = arith.constant 1.000000e-01 : f32
    %32 = vector.broadcast %cst_14 : f32 to vector<4x640xf32>
    %33 = arith.mulf %29, %32 : vector<4x640xf32>
    %34 = arith.select %31, %29, %33 : vector<4x640xi1>, vector<4x640xf32>
    %35 = arith.truncf %34 : vector<4x640xf32> to vector<4x640xbf16>
    %c0_15 = arith.constant 0 : index
    %c0_16 = arith.constant 0 : index
    %c0_17 = arith.constant 0 : index
    %36 = vector.load %arg7[%c0_15, %c0_16, %c0_17] : memref<1x4x640xbf16, #tpu.memory_space<vmem>>, vector<1x4x640xbf16>
    %37 = vector.shape_cast %36 : vector<1x4x640xbf16> to vector<4x640xbf16>
    %38 = vector.shape_cast %35 : vector<4x640xbf16> to vector<1x4x640xbf16>
    tpu.vector_store %arg7[%c0_15, %c0_16, %c0_17], %38 {strides = array<i32>} : memref<1x4x640xbf16, #tpu.memory_space<vmem>>, vector<1x4x640xbf16>,
    return
  }
  func.func @transform_0(%arg0: i32, %arg1: i32) -> (i32, i32, i32) {
    %c1_i32 = arith.constant 1 : i32
    %0 = arith.minsi %arg1, %c1_i32 : i32
    %c0_i32 = arith.constant 0 : i32
    %c0_i32_0 = arith.constant 0 : i32
    return %arg0, %c0_i32, %0 : i32, i32, i32
  }
  func.func @transform_1(%arg0: i32, %arg1: i32) -> (i32, i32, i32) {
    %c5_i32 = arith.constant 5 : i32
    %0 = arith.muli %arg1, %c5_i32 : i32
    %c1_i32 = arith.constant 1 : i32
    %1 = arith.subi %0, %c1_i32 : i32
    %c0_i32 = arith.constant 0 : i32
    %2 = arith.maxsi %1, %c0_i32 : i32
    %c0_i32_0 = arith.constant 0 : i32
    %c0_i32_1 = arith.constant 0 : i32
    return %arg0, %c0_i32_0, %2 : i32, i32, i32
  }
  func.func @transform_2(%arg0: i32, %arg1: i32) -> (i32, i32, i32) {
    %c1_i32 = arith.constant 1 : i32
    %0 = arith.addi %arg1, %c1_i32 : i32
    %c5_i32 = arith.constant 5 : i32
    %1 = arith.muli %0, %c5_i32 : i32
    %c5_i32_0 = arith.constant 5 : i32
    %2 = arith.minsi %1, %c5_i32_0 : i32
    %c0_i32 = arith.constant 0 : i32
    %c0_i32_1 = arith.constant 0 : i32
    return %arg0, %c0_i32, %2 : i32, i32, i32
  }
  func.func @transform_3(%arg0: i32, %arg1: i32) -> (i32, i32) {
    %c0_i32 = arith.constant 0 : i32
    %c0_i32_0 = arith.constant 0 : i32
    %c0_i32_1 = arith.constant 0 : i32
    return %c0_i32, %c0_i32_0 : i32, i32
  }
  func.func @transform_4(%arg0: i32, %arg1: i32) -> (i32, i32) {
    %c0_i32 = arith.constant 0 : i32
    %c0_i32_0 = arith.constant 0 : i32
    %c0_i32_1 = arith.constant 0 : i32
    return %c0_i32, %c0_i32_0 : i32, i32
  }
  func.func @transform_5(%arg0: i32, %arg1: i32) -> (i32, i32, i32) {
    %c0_i32 = arith.constant 0 : i32
    %c0_i32_0 = arith.constant 0 : i32
    return %arg0, %c0_i32, %arg1 : i32, i32, i32
  }
}

</mosaic_0001>

<bundles_post_ra>
// kernel: tpu_custom_call.1
= control target key start
LH: loop header
LB: loop body
LE: loop exit
PB: predicated region body
PF: predicated region fallthrough
CT: control target
= control target key end

     0   :  { %s1647_s0 = inlined_call_operand.vmem [shape: bf16[2,1,700], index: 0, kind: input, shape index: {}]   ;;  %s1648_s1 = inlined_call_operand.vmem [shape: bf16[2,1,700], index: 1, kind: input, shape index: {}]   ;;  %s1649_s2 = inlined_call_operand.vmem [shape: bf16[2,1,700], index: 2, kind: input, shape index: {}]   ;;  %s1650_s3 = inlined_call_operand.vmem [shape: bf16[4,5], index: 3, kind: input, shape index: {}]   ;;  %s1651_s4 = inlined_call_operand.vmem [shape: f32[4,1], index: 4, kind: input, shape index: {}]   ;;  %s1652_s5 = inlined_call_operand.hbm [shape: bf16[2,4,700], index: 5, kind: output, shape index: {}]  }
   0x1   :  { %1653 = sst [smem:[#allocation5_spill]] %s1647_s0 }
   0x2   :  { %1654 = sst [smem:[#allocation6_spill]] %s1648_s1 }
   0x3   :  { %10 = vsyncpa [#allocation3], 0 }
   0x4   :  { %12 = vsyncpa [#allocation3 + $0x1], 0  ;;  %s1284_s18 = smov 0   ;;  %s1286_s19 = smov 0  }
   0x5   :  { %s1288_s20 = smov 0   ;;  %s1290_s21 = smov 0  }
   0x6   :  { %s1292_s22 = smov 0   ;;  %s1294_s23 = smov 0  }
   0x7   :  { %s1296_s24 = smov 0   ;;  %s1298_s25 = smov 0  }
   0x8 LB: > { %s1002_s26 = sadd.s32 4294967295, %s1244_s25   ;;  %s1003_s27 = sadd.s32 4294967294, %s1244_s25   ;;  %s1244_s25 = sphi %s1298_s25, %s18_s25   ;;  %s1240_s24 = sphi %s1296_s24, %s1674_s24   ;;  %s1236_s23 = sphi %s1294_s23, %s1673_s23   ;;  %s1232_s22 = sphi %s1292_s22, %s1672_s22   ;;  %s1228_s21 = sphi %s1290_s21, %s1671_s21   ;;  %s1224_s20 = sphi %s1288_s20, %s1670_s20   ;;  %s1220_s19 = sphi %s1286_s19, %s1669_s19   ;;  %s1216_s18 = sphi %s1284_s18, %s1668_s18  }
   0x9   : > { %s27_s28 = sadd.s32 1, %s1236_s23  ;;  %s30_s29 = sadd.s32 1, %s1240_s24 }
   0xa   : > { %p28_p0 = scmp.ge.s32.totalorder %s27_s28, 2  ;;  %p195_p1 = scmp.ne.s32.totalorder %s1224_s20, %s1220_s19 }
   0xb   : > { %p196_p2 = scmp.eq.s32.totalorder %s1002_s26, 3  ;;  %p201_p5 = scmp.ne.s32.totalorder %s1220_s19, %s1216_s18 }
   0xc   : > { %s1676_s28 = smov (%p28_p0, %s27_s28), 0  ;;  %s1678_s29 = smov (!%p28_p0, %s30_s29), %s1240_s24 }
   0xd   : > { %s181_s30 = ssub.s32 %s1236_s23, %s1676_s28  ;;  %p1335_p3 = por %p196_p2, %p195_p1 }
   0xe   : > { %p32_p4 = scmp.ge.s32.totalorder %s1678_s29, 2  ;;  %p202_p6 = scmp.eq.s32.totalorder %s1003_s27, 3 }
   0xf   : > { %p1008_p7 = scmp.ge.s32.totalorder %s1244_s25, 1  ;;  %p284_p9 = scmp.lt.s32.totalorder %s1244_s25, 5 }
  0x10   : > { %s1680_s29 = smov (%p32_p4, %s1678_s29), 0  ;;  %p1344_p8 = por %p202_p6, %p201_p5 }
  0x11   : > { %s180_s8 = ssub.s32 %s1240_s24, %s1680_s29  ;;  %s185_s9 = sadd.s32 1, %s1224_s20 }
  0x12   : > { %s182_s10 = sor.u32 %s181_s30, %s180_s8  ;;  %p285_p10 = pnand %p1008_p7, %p284_p9 }
  0x13   : > { %p183_p11 = scmp.eq.s32.totalorder %s182_s10, 0  ;;  %p342_p12 = scmp.lt.s32.totalorder (!%p285_p10), %s1228_s21, 1 }
  0x14   : > { %288 = sbr.rel (%p285_p10) target bundleno = 502 (0x1f6), region = 40  ;;  %p348_p13 = scmp.lt.s32.totalorder (!%p285_p10), %s1232_s22, 1 }
  0x15   : > { %s1353_s11 = scalar_select %p183_p11, %s1224_s20, %s185_s9  }
  0x16   : > { %s399_s12 = smul.u32 (!%p285_p10), 640, %s1228_s21  ;;  %s1659_s0 = sld [smem:[#allocation5_spill]] (!%p285_p10) }
  0x17   : > { %s1368_s26 = smul.u32 (!%p285_p10), 5, %s1228_s21  ;;  %s1662_s1 = sld [smem:[#allocation6_spill]] (!%p285_p10) }
  0x18   : > { %s1018_s16 = sadd.s32 (!%p285_p10), 4294967168, %s399_s12  ;;  %s376_s8 = sadd.s32 (!%p285_p10), 1, %s1228_s21 }
  0x19   : > { %v401_v0 = vlaneseq  ;;  %v1246_v1 = vmov 0   ;;  %s343_s13 = scalar_select %p342_p12, %s1228_s21, 1  ;;  %v1363_v7 = vstv %s1018_s16 }
  0x1a   : > { %1138 = vset.pattern.permute.xlu0 %v1246_v1  ;;  %s349_s14 = scalar_select %p348_p13, %s1232_s22, 1  ;;  %v1386_v16 = vunpack.c.l.b16 %v1246_v1  ;;  %v1390_v19 = vunpack.c.h.b16 %v1246_v1 }
  0x1b   : > { %v402_v2 = vand.u32 127, %v401_v0  ;;  %s344_s15 = smul.u32 5, %s343_s13  ;;  %s1009_s27 = sadd.s32 4294967295, %s1368_s26 }
  0x1c   : > { %s1361_s17 = smul.u32 6, %s349_s14  ;;  %p363_p1 = scmp.gt.s32.totalorder %s1009_s27, 0 }
  0x1d   : > { %v403_v3 = vadd.s32 128, %v402_v2  ;;  %v404_v4 = vadd.s32 256, %v402_v2  ;;  %v405_v5 = vadd.s32 384, %v402_v2  ;;  %v406_v6 = vadd.s32 512, %v402_v2  ;;  %p350_p0 = scmp.lt.s32.totalorder %s344_s15, 5  ;;  %p1010_p2 = scmp.lt.s32.totalorder %s1009_s27, 5 }
  0x1e   : > { %v407_v8 = vadd.s32 640, %v402_v2  ;;  %v410_v9 = vadd.s32 %v1363_v7, %v402_v2  ;;  %s364_s12 = scalar_select %p363_p1, %s1009_s27, 0  ;;  %v408_v23 = vadd.s32 768, %v402_v2 }
  0x1f   : > { %v411_v10 = vadd.s32 %v1363_v7, %v403_v3  ;;  %v412_v11 = vadd.s32 %v1363_v7, %v404_v4  ;;  %v413_v12 = vadd.s32 %v1363_v7, %v405_v5  ;;  %v414_v13 = vadd.s32 %v1363_v7, %v406_v6  ;;  %s1682_s15 = smov (!%p350_p0, %s344_s15), 5  ;;  %s1247_s27 = smov 126  }
  0x20   : > { %vm432_vm0 = vcmp.ge.s32.totalorder %v410_v9, 0  ;;  %vm439_vm2 = vcmp.lt.s32.totalorder %v410_v9, 700  ;;  %v415_v15 = vadd.s32 %v1363_v7, %v407_v8  ;;  %s353_s30 = sadd.s32 %s1361_s17, %s1682_s15  ;;  %s1684_s12 = smov (!%p1010_p2, %s364_s12), 5  ;;  %v416_v35 = vadd.s32 %v1363_v7, %v408_v23 }
  0x21   : > { %vm433_vm1 = vcmp.ge.s32.totalorder %v411_v10, 0  ;;  %vm440_vm3 = vcmp.lt.s32.totalorder %v411_v10, 700  ;;  %vm1373_vm4 = vmand %vm432_vm0, %vm439_vm2  ;;  %vm434_vm5 = vcmp.ge.s32.totalorder %v412_v11, 0  ;;  %vm441_vm6 = vcmp.lt.s32.totalorder %v412_v11, 700  ;;  %s354_s10 = scalar_lea.vmem %s1659_s0, %s353_s30  ;;  %s370_s13 = sadd.s32 %s1361_s17, %s1684_s12 }
  0x22   : > { %vm447_vm7 = vmand %vm433_vm1, %vm440_vm3  ;;  %vm435_vm8 = vcmp.ge.s32.totalorder %v413_v12, 0  ;;  %vm442_vm9 = vcmp.lt.s32.totalorder %v413_v12, 700  ;;  %v417_v17 = vld [vmem:[%s354_s10] sm:$0x1f]  ;;  %vm436_vm12 = vcmp.ge.s32.totalorder %v414_v13, 0  ;;  %vm443_vm13 = vcmp.lt.s32.totalorder %v414_v13, 700  ;;  %s371_s16 = scalar_lea.vmem %s1662_s1, %s370_s13 }
  0x23   : > { %vm453_vm10 = vmpackc.low %vm447_vm7, %vm1373_vm4  ;;  %421 = vst [vmem:[#allocation1] ss:$9 sm:$0xff] %v417_v17  ;;  %vm437_vm15 = vcmp.ge.s32.totalorder %v415_v15, 0  ;;  %vm444_vm0 = vcmp.lt.s32.totalorder %v415_v15, 700  ;;  %v418_v29 = vld [vmem:[%s371_s16] sm:$0x1] }
  0x24   : > { %v457_v18 = vsel %vm453_vm10, 65537, %v1246_v1  ;;  %vm1394_vm11 = vmand %vm434_vm5, %vm441_vm6  ;;  %s1248_s30 = smov 124   ;;  %s1249_s9 = smov 127  }
  0x25   : > { %v462_v21 = vperm.slane %v457_v18, 4  ;;  %v461_v22 = vperm.slane %v457_v18, 0  ;;  %vm449_vm14 = vmand %vm435_vm8, %vm442_vm9  ;;  %s377_s21 = smul.u32 5, %s376_s8  ;;  %s1250_s10 = smov 125  }
  0x26   : > { %vm454_vm1 = vmpackc.low %vm449_vm14, %vm1394_vm11  ;;  %s879_s13 = ssub.s32 (%p1335_p3), 6, %s1368_s26 }
  0x27   : > { %v475_v24 = vunpack.c.l.b16 %v462_v21  ;;  %v476_v25 = vunpack.c.h.b16 %v462_v21  ;;  %v468_v26 = vunpack.c.l.b16 %v461_v22  ;;  %v469_v27 = vunpack.c.h.b16 %v461_v22  ;;  %vm450_vm2 = vmand %vm436_vm12, %vm443_vm13  ;;  %p378_p4 = scmp.lt.s32.totalorder %s377_s21, 5  ;;  %p880_p5 = scmp.lt.s32.totalorder (%p1335_p3), %s879_s13, 5 }
  0x28   : > { %v458_v28 = vsel %vm454_vm1, 65537, %v1246_v1  ;;  %vm451_vm3 = vmand %vm437_vm15, %vm444_vm0 }
  0x29   : > { %vm479_vm4 = vcmp.ne.s32.totalorder %v475_v24, %v1386_v16  ;;  %vm480_vm5 = vcmp.ne.s32.totalorder %v476_v25, %v1390_v19  ;;  %vm472_vm6 = vcmp.ne.s32.totalorder %v468_v26, %v1386_v16  ;;  %vm473_vm7 = vcmp.ne.s32.totalorder %v469_v27, %v1390_v19  ;;  %vm455_vm8 = vmpackc.low %vm451_vm3, %vm450_vm2  ;;  %s1686_s21 = smov (!%p378_p4, %s377_s21), 5 }
  0x2a   : > { %vm481_vm9 = vmpackc.low %vm480_vm5, %vm479_vm4  ;;  %v463_v30 = vperm.slane %v458_v28, 0  ;;  %v464_v31 = vperm.slane %v458_v28, 4  ;;  %v459_v32 = vsel %vm455_vm8, 65537, %v1246_v1  ;;  %v422_v36 = vld [vmem:[#allocation1] sm:$0xff]  ;;  %v423_v43 = vld [vmem:[#allocation1 + $0x9] sm:$0xff]  ;;  %vm438_vm4 = vcmp.ge.s32.totalorder %v416_v35, 0 }
  0x2b   : > { %vm474_vm10 = vmpackc.low %vm473_vm7, %vm472_vm6  ;;  %v465_v33 = vperm.slane %v459_v32, 0  ;;  %v466_v34 = vperm.slane %v459_v32, 4  ;;  %v1417_v41 = vsel %vm481_vm9, %v422_v36, 0  ;;  %v424_v48 = vld [vmem:[#allocation1 + $0x12] sm:$0xff]  ;;  %v425_v56 = vld [vmem:[#allocation1 + $0x1b] sm:$0xff]  ;;  %vm445_vm5 = vcmp.lt.s32.totalorder %v416_v35, 700 }
  0x2c   : > { %v1415_v37 = vsel %vm474_vm10, %v418_v29, 0  ;;  %v482_v38 = vunpack.c.l.b16 %v463_v30  ;;  %v483_v39 = vunpack.c.h.b16 %v463_v30  ;;  %v489_v40 = vunpack.c.l.b16 %v464_v31  ;;  %v426_v59 = vld [vmem:[#allocation1 + $0x24] sm:$0xff]  ;;  %vm452_vm9 = vmand %vm438_vm4, %vm445_vm5  ;;  %s1688_s21 = smov (!%p378_p4, %s1686_s21), 5 }
  0x2d   : > { %v525_v42 = vshll.u32 %v1415_v37, 16  ;;  %v490_v44 = vunpack.c.h.b16 %v464_v31  ;;  %v496_v45 = vunpack.c.l.b16 %v465_v33  ;;  %v571_v46 = vrot.slane %v1417_v41, 7  ;;  %vm456_vm10 = vmpackc.low %vm452_vm9, %vm452_vm9  ;;  %s385_s12 = sadd.s32 %s1361_s17, %s1688_s21  ;;  %s1251_s17 = smov 2  }
  0x2e   : > { %v528_v47 = vshll.u32 %v1417_v41, 16  ;;  %vm486_vm11 = vcmp.ne.s32.totalorder %v482_v38, %v1386_v16  ;;  %vm487_vm12 = vcmp.ne.s32.totalorder %v483_v39, %v1390_v19  ;;  %vm493_vm14 = vcmp.ne.s32.totalorder %v489_v40, %v1386_v16  ;;  %s386_s15 = scalar_lea.vmem %s1649_s2, %s385_s12 }
  0x2f   : > { %vm488_vm13 = vmpackc.low %vm487_vm12, %vm486_vm11  ;;  %vm494_vm15 = vcmp.ne.s32.totalorder %v490_v44, %v1390_v19  ;;  %v625_v49 = vrot.slane %v1417_v41, 6  ;;  %v497_v50 = vunpack.c.h.b16 %v465_v33  ;;  %576 = vrot.lane.b32.xlu1 %v571_v46, %s1247_s27  ;;  %vm500_vm1 = vcmp.ne.s32.totalorder %v496_v45, %v1386_v16  ;;  %v419_v18 = vld [vmem:[%s386_s15] sm:$0x1] }
  0x30   : > { %v1113_v51 = vpack.i.bf16 %v528_v47, %v525_v42  ;;  %v1428_v52 = vsel %vm488_vm13, %v423_v43, 0  ;;  %vm495_vm0 = vmpackc.low %vm494_vm15, %vm493_vm14  ;;  %v503_v57 = vunpack.c.l.b16 %v466_v34  ;;  %v504_v58 = vunpack.c.h.b16 %v466_v34 }
  0x31   : > { %v1431_v53 = vsel %vm495_vm0, %v424_v48, 0  ;;  %631 = vrot.lane.b32.xlu2 %v625_v49, %s1248_s30  ;;  %vm501_vm2 = vcmp.ne.s32.totalorder %v497_v50, %v1390_v19  ;;  %v531_v54 = vshll.u32 %v1428_v52, 16  ;;  %v572_v60 = vrot.slane %v1428_v52, 7 }
  0x32   : > { %1114 = vrot.lane.b32.xlu0 %v1113_v51, %s1249_s9  ;;  %v534_v55 = vshll.u32 %v1431_v53, 16  ;;  %vm502_vm3 = vmpackc.low %vm501_vm2, %vm500_vm1  ;;  %vm507_vm6 = vcmp.ne.s32.totalorder %v503_v57, %v1386_v16  ;;  %vm508_vm7 = vcmp.ne.s32.totalorder %v504_v58, %v1390_v19  ;;  %v573_v62 = vrot.slane %v1431_v53, 7 }
  0x33   : > { %vm509_vm8 = vmpackc.low %vm508_vm7, %vm507_vm6  ;;  %v1442_v61 = vsel %vm502_vm3, %v425_v56, 0  ;;  %v591_v4 = vrot.slane %v528_v47, 7  ;;  %v592_v5 = vrot.slane %v531_v54, 7  ;;  %v460_v7 = vsel %vm456_vm10, 65537, %v1246_v1 }
  0x34   : > { %v1118_v63 = vpack.i.bf16 %v534_v55, %v531_v54  ;;  %v1445_v0 = vsel %vm509_vm8, %v426_v59, 0  ;;  %v537_v2 = vshll.u32 %v1442_v61, 16  ;;  %v626_v9 = vrot.slane %v1428_v52, 6 }
  0x35   : > { %v540_v3 = vshll.u32 %v1445_v0, 16  ;;  %v1128_v8 = vpack.i.bf16 %v592_v5, %v591_v4  ;;  %v467_v10 = vperm.slane %v460_v7, 0  ;;  %v593_v11 = vrot.slane %v534_v55, 7 }
  0x36   : > { %v594_v12 = vrot.slane %v537_v2, 7  ;;  %v575_v15 = vrot.slane %v1445_v0, 7  ;;  %v574_v1 = vrot.slane %v1442_v61, 7  ;;  %v627_v20 = vrot.slane %v1431_v53, 6 }
  0x37   : > { %578 = vrot.lane.b32.xlu1 %v572_v60, %s1247_s27  ;;  %v1123_v6 = vpack.i.bf16 %v540_v3, %v537_v2  ;;  %v510_v13 = vunpack.c.l.b16 %v467_v10  ;;  %v511_v14 = vunpack.c.h.b16 %v467_v10  ;;  %v628_v22 = vrot.slane %v1442_v61, 6 }
  0x38   : > { %v1133_v17 = vpack.i.bf16 %v594_v12, %v593_v11  ;;  %v595_v23 = vrot.slane %v540_v3, 7  ;;  %v629_v25 = vrot.slane %v1445_v0, 6  ;;  %vm649_vm14 = vcmask 1040384  }
  0x39   : > { %580 = vrot.lane.b32.xlu2 %v573_v62, %s1247_s27  ;;  %vm514_vm11 = vcmp.ne.s32.totalorder %v510_v13, %v1386_v16  ;;  %vm515_vm12 = vcmp.ne.s32.totalorder %v511_v14, %v1390_v19  ;;  %vm650_vm15 = vsmask.f32 256  ;;  %vm554_vm0 = vcmask 1039360  }
  0x3a   : > { %1119 = vrot.lane.b32.xlu0 %v1118_v63, %s1249_s9  ;;  %vm516_vm13 = vmpackc.low %vm515_vm12, %vm514_vm11  ;;  %vm683_vm1 = vcmask 1041408   ;;  %vm684_vm2 = vsmask.f32 1280  ;;  %vm586_vm5 = vcmask 1031168   ;;  %vm612_vm6 = vcmask 1022976  }
  0x3b   : > { %v523_v21 = vsel %vm516_vm13, %v419_v18, 0  ;;  %vm1474_vm3 = vmand %vm649_vm14, %vm650_vm15  ;;  %vm643_vm7 = vcmask 1014784   ;;  %vm746_vm8 = vcmask 1042432   ;;  %vm736_vm9 = vcmask 15360  }
  0x3c   : > { %v597_v24 = vshll.u32 %v523_v21, 16  ;;  %v630_v19 = vrot.slane %v523_v21, 6  ;;  %vm1480_vm4 = vmand %vm683_vm1, %vm684_vm2  ;;  %vm742_vm10 = vcmask 39936   ;;  %vm861_vm2 = vcmask 1043456  }
  0x3e   : > { %v599_v16 = vrot.slane %v597_v24, 7 }
  0x3f   : > { %1124 = vrot.lane.b32.xlu1 %v1123_v6, %s1249_s9  ;;  %s339_s9 = sand.u32 1, %s1220_s19  }
  0x40   : > { %s1033_s21 = smul.u32 10, %s339_s9  ;;  %s1578_s12 = scalar_lea.sflag [#allocation3], %s339_s9 }
  0x41   : > { %1129 = vrot.lane.b32.xlu2 %v1128_v8, %s1250_s10 }
  0x42   : > { %633 = vrot.lane.b32.xlu0 %v626_v9, %s1248_s30 }
  0x47   : > { %584 = vrot.lane.b32.xlu1 %v575_v15, %s1247_s27 }
  0x49   : > { %1134 = vrot.lane.b32.xlu2 %v1133_v17, %s1250_s10 }
  0x4a   : > { %582 = vrot.lane.b32.xlu0 %v574_v1, %s1247_s27 }
  0x4f   : > { %635 = vrot.lane.b32.xlu1 %v627_v20, %s1248_s30 }
  0x51   : > { %637 = vrot.lane.b32.xlu2 %v628_v22, %s1248_s30 }
  0x52   : > { %608 = vrot.lane.b32.xlu0 %v595_v23, %s1250_s10 }
  0x57   : > { %610 = vrot.lane.b32.xlu1 %v599_v16, %s1250_s10  ;;  %s1571_s10 = scalar_lea.vmem [#allocation2], %s1033_s21 }
  0x59   : > { %641 = vrot.lane.b32.xlu2 %v630_v19, %s1248_s30 }
  0x5a   : > { %639 = vrot.lane.b32.xlu0 %v629_v25, %s1248_s30 }
  0x8b   : > { %v632_v26 = vpop.permute.xlu2 %631 }
  0x93   : > { %v581_v27 = vpop.permute.xlu2 %580 }
  0x9b   : > { %v1130_v29 = vpop.permute.xlu2 %1129 }
  0x9c   : > { %v1131_v34 = vunpack.i.l.bf16 %v1130_v29  ;;  %v1132_v46 = vunpack.i.h.bf16 %v1130_v29 }
  0x9e   : > { %v613_v50 = vsel %vm612_vm6, %v1131_v34, %v1132_v46 }
  0xa1   : > { %v577_v28 = vpop.permute.xlu1 %576 }
  0xa4   : > { %v1115_v30 = vpop.permute.xlu0 %1114 }
  0xa5   : > { %v1117_v31 = vunpack.i.h.bf16 %v1115_v30  ;;  %v1116_v32 = vunpack.i.l.bf16 %v1115_v30 }
  0xa7   : > { %v555_v35 = vsel %vm554_vm0, %v1116_v32, %v1117_v31 }
  0xa8   : > { %v652_v38 = vsel %vm1474_vm3, %v1415_v37, %v555_v35  ;;  %v1252_v35 = vmov 65535  }
  0xa9   : > { %v661_v39 = vsel %vm649_vm14, %v652_v38, %v577_v28  ;;  %v579_v40 = vpop.permute.xlu1 %578  ;;  %v747_v38 = vsel %vm683_vm1, 4294967295, %v1252_v35 }
  0xaa   : > { %v686_v42 = vsel %vm1480_vm4, %v661_v39, %v1131_v34  ;;  %v587_v48 = vsel %vm586_vm5, %v577_v28, %v579_v40  ;;  %v588_v5 = vsel %vm586_vm5, %v579_v40, %v581_v27  ;;  %v712_v39 = vld [vmem:[%s1651_s4] sm:$0xf]  ;;  %v748_v40 = vsel %vm746_vm8, %v747_v38, 0 }
  0xab   : > { %v695_v43 = vsel %vm683_vm1, %v686_v42, %v632_v26 }
  0xac   : > { %v1120_v44 = vpop.permute.xlu0 %1119  ;;  %724 = vrot.lane.b32.xlu0 %v695_v43, %s1251_s17 }
  0xad   : > { %v1121_v45 = vunpack.i.l.bf16 %v1120_v44  ;;  %v1122_v57 = vunpack.i.h.bf16 %v1120_v44 }
  0xaf   : > { %v556_v47 = vsel %vm554_vm0, %v1117_v31, %v1121_v45  ;;  %v557_v60 = vsel %vm554_vm0, %v1121_v45, %v1122_v57 }
  0xb0   : > { %v653_v37 = vsel %vm1474_vm3, %v1417_v41, %v556_v47  ;;  %v1135_v41 = vpop.permute.xlu2 %1134  ;;  %v654_v7 = vsel %vm1474_vm3, %v1428_v52, %v557_v60 }
  0xb1   : > { %v1125_v49 = vpop.permute.xlu1 %1124  ;;  %v665_v51 = vsel %vm649_vm14, %v653_v37, %v587_v48  ;;  %v1137_v63 = vunpack.i.h.bf16 %v1135_v41  ;;  %v1136_v2 = vunpack.i.l.bf16 %v1135_v41  ;;  %v669_v12 = vsel %vm649_vm14, %v654_v7, %v588_v5  ;;  %v711_v37 = vld [vmem:[%s1650_s3] sm:$0x3] }
  0xb2   : > { %v687_v56 = vsel %vm1480_vm4, %v665_v51, %v613_v50  ;;  %v1126_v59 = vunpack.i.l.bf16 %v1125_v49  ;;  %v1127_v14 = vunpack.i.h.bf16 %v1125_v49 }
  0xb3   : > { %v614_v11 = vsel %vm612_vm6, %v1132_v46, %v1136_v2  ;;  %v615_v13 = vsel %vm612_vm6, %v1136_v2, %v1137_v63 }
  0xb4   : > { %v634_v54 = vpop.permute.xlu0 %633  ;;  %v558_v3 = vsel %vm554_vm0, %v1122_v57, %v1126_v59  ;;  %v688_v52 = vsel %vm1480_vm4, %v669_v12, %v614_v11  ;;  %v559_v22 = vsel %vm554_vm0, %v1126_v59, %v1127_v14  ;;  %v657_v23 = vsel %vm1474_vm3, %v1445_v0, %v1127_v14 }
  0xb5   : > { %v644_v55 = vsel %vm643_vm7, %v632_v26, %v634_v54  ;;  %v655_v8 = vsel %vm1474_vm3, %v1431_v53, %v558_v3  ;;  %v656_v24 = vsel %vm1474_vm3, %v1442_v61, %v559_v22  ;;  %vm857_vm0 = vcmask 1045508  }
  0xb6   : > { %v698_v58 = vsel %vm683_vm1, %v687_v56, %v644_v55 }
  0xb7   : > { %726 = vrot.lane.b32.xlu1 %v698_v58, %s1251_s17 }
  0xb8   : > { %v638_v10 = vpop.permute.xlu2 %637 }
  0xb9   : > { %v585_v62 = vpop.permute.xlu1 %584 }
  0xbc   : > { %v583_v4 = vpop.permute.xlu0 %582 }
  0xbd   : > { %v589_v6 = vsel %vm586_vm5, %v581_v27, %v583_v4  ;;  %v590_v16 = vsel %vm586_vm5, %v583_v4, %v585_v62  ;;  %v681_v27 = vsel %vm649_vm14, %v657_v23, %v585_v62 }
  0xbe   : > { %v673_v9 = vsel %vm649_vm14, %v655_v8, %v589_v6  ;;  %v677_v29 = vsel %vm649_vm14, %v656_v24, %v590_v16 }
  0xbf   : > { %v689_v53 = vsel %vm1480_vm4, %v673_v9, %v615_v13 }
  0xc0   : > { %v642_v26 = vpop.permute.xlu2 %641 }
  0xc1   : > { %v636_v15 = vpop.permute.xlu1 %635 }
  0xc2   : > { %v645_v17 = vsel %vm643_vm7, %v634_v54, %v636_v15  ;;  %v646_v1 = vsel %vm643_vm7, %v636_v15, %v638_v10 }
  0xc3   : > { %v701_v20 = vsel %vm683_vm1, %v688_v52, %v645_v17  ;;  %v704_v21 = vsel %vm683_vm1, %v689_v53, %v646_v1 }
  0xc4   : > { %v609_v18 = vpop.permute.xlu0 %608  ;;  %728 = vrot.lane.b32.xlu2 %v701_v20, %s1251_s17  ;;  %730 = vrot.lane.b32.xlu0 %v704_v21, %s1251_s17 }
  0xc5   : > { %v616_v19 = vsel %vm612_vm6, %v1137_v63, %v609_v18 }
  0xc6   : > { %v690_v32 = vsel %vm1480_vm4, %v677_v29, %v616_v19 }
  0xc9   : > { %v611_v25 = vpop.permute.xlu1 %610 }
  0xca   : > { %v617_v28 = vsel %vm612_vm6, %v609_v18, %v611_v25 }
  0xcb   : > { %v691_v0 = vsel %vm1480_vm4, %v681_v27, %v617_v28 }
  0xcc   : > { %v640_v30 = vpop.permute.xlu0 %639  ;;  %715 = vperm.xlu0 %1138, %v712_v39  }
  0xcd   : > { %v647_v31 = vsel %vm643_vm7, %v638_v10, %v640_v30  ;;  %v648_v61 = vsel %vm643_vm7, %v640_v30, %v642_v26 }
  0xce   : > { %v710_v33 = vsel %vm683_vm1, %v691_v0, %v648_v61  ;;  %v707_v34 = vsel %vm683_vm1, %v690_v32, %v647_v31 }
  0xcf   : > { %734 = vrot.lane.b32.xlu2 %v710_v33, %s1251_s17  ;;  %732 = vrot.lane.b32.xlu1 %v707_v34, %s1251_s17 }
 0x11e   : > { %v725_v36 = vpop.permute.xlu0 %724  ;;  %v729_v42 = vpop.permute.xlu2 %728 }
 0x129   : > { %v727_v43 = vpop.permute.xlu1 %726  ;;  %v735_v51 = vpop.permute.xlu2 %734 }
 0x12a   : > { %v737_v44 = vsel %vm736_vm9, %v725_v36, %v727_v43  ;;  %v738_v45 = vsel %vm736_vm9, %v727_v43, %v729_v42 }
 0x12b   : > { %v750_v46 = vand.u32 %v748_v40, %v737_v44  ;;  %v753_v47 = vand.u32 %v748_v40, %v738_v45 }
 0x12d   : > { %771 = vmatpush.bf16.msra.mxu0 %v750_v46  ;;  %784 = vmatpush.bf16.msra.mxu1 %v753_v47 }
 0x130   : > { %1019 = vmatmul.msk.bf16.vlgmr.msra.gmra.mxu0 %vm742_vm10, %v711_v37  ;;  %1020 = vmatmul.msk.bf16.vlgmr.msra.gmra.mxu1 %vm742_vm10, %v711_v37 }
 0x136   : > { %v731_v48 = vpop.permute.xlu0 %730 }
 0x137   : > { %v739_v49 = vsel %vm736_vm9, %v729_v42, %v731_v48 }
 0x138   : > { %v756_v50 = vand.u32 %v748_v40, %v739_v49 }
 0x13a   : > { %797 = vmatpush.bf16.msra.mxu2 %v756_v50 }
 0x13d   : > { %1021 = vmatmul.msk.bf16.vlgmr.msra.gmra.mxu2 %vm742_vm10, %v711_v37 }
 0x13e   : > { %v716_v63 = vpop.permute.xlu0 %715 }
 0x141   : > { %v733_v54 = vpop.permute.xlu1 %732 }
 0x142   : > { %v741_v55 = vsel %vm736_vm9, %v733_v54, %v735_v51  ;;  %v740_v56 = vsel %vm736_vm9, %v731_v48, %v733_v54 }
 0x143   : > { %v759_v57 = vand.u32 %v748_v40, %v740_v56  ;;  %v762_v58 = vand.u32 %v748_v40, %v741_v55 }
 0x145   : > { %810 = vmatpush.bf16.msra.mxu3 %v759_v57  ;;  %823 = vmatpush.bf16.msrb.mxu0 %v762_v58 }
 0x148   : > { %1022 = vmatmul.msk.bf16.vlgmr.msra.gmra.mxu3 %vm742_vm10, %v711_v37  ;;  %1023 = vmatmul.msk.bf16.vlgmr.msrb.gmra.mxu0 %vm742_vm10, %v711_v37 }
 0x1ad   : > { %v773_v41 = vpop.f32.mrf.mxu0  ;;  %v786_v59 = vpop.f32.mrf.mxu1 }
 0x1ae   : > { %v774_v3 = vadd.f32 %v773_v41, %v716_v63  ;;  %v787_v4 = vadd.f32 %v786_v59, %v716_v63 }
 0x1b0   : > { %v834_v6 = vmul.f32 0.1, %v774_v3  ;;  %v835_v7 = vmul.f32 0.1, %v787_v4  ;;  %vm829_vm11 = vcmp.ge.f32.partialorder %v774_v3, 0.0  ;;  %vm830_vm12 = vcmp.ge.f32.partialorder %v787_v4, 0.0 }
 0x1b2   : > { %v839_v12 = vsel %vm829_vm11, %v774_v3, %v834_v6  ;;  %v840_v13 = vsel %vm830_vm12, %v787_v4, %v835_v7 }
 0x1b3   : > { %v844_v53 = vpack.c.bf16 %v840_v13, %v839_v12 }
 0x1b5   : > { %v775_v60 = vpop.f32.mrf.mxu0  ;;  %v788_v62 = vpop.f32.mrf.mxu1  ;;  %v850_v16 = vrot.slane %v844_v53, 2 }
 0x1b7   : > { %v856_v28 = vsel %vm683_vm1, %v844_v53, %v850_v16 }
 0x1c0   : > { %v799_v2 = vpop.f32.mrf.mxu2 }
 0x1c1   : > { %v800_v9 = vadd.f32 %v799_v2, %v716_v63 }
 0x1c3   : > { %v836_v1 = vmul.f32 0.1, %v800_v9  ;;  %vm831_vm14 = vcmp.ge.f32.partialorder %v800_v9, 0.0 }
 0x1c5   : > { %v825_v5 = vpop.f32.mrf.mxu0  ;;  %v841_v23 = vsel %vm831_vm14, %v800_v9, %v836_v1 }
 0x1c6   : > { %v826_v8 = vadd.f32 %v825_v5, %v716_v63 }
 0x1c8   : > { %vm833_vm13 = vcmp.ge.f32.partialorder %v826_v8, 0.0  ;;  %v838_v10 = vmul.f32 0.1, %v826_v8  ;;  %v801_v11 = vpop.f32.mrf.mxu2 }
 0x1ca   : > { %v843_v14 = vsel %vm833_vm13, %v826_v8, %v838_v10 }
 0x1cb   : > { %v846_v15 = vpack.c.bf16 %v843_v14, %v843_v14  ;;  %v812_v17 = vpop.f32.mrf.mxu3 }
 0x1cc   : > { %v813_v52 = vadd.f32 %v812_v17, %v716_v63 }
 0x1cd   : > { %v853_v18 = vrot.slane %v846_v15, 2  ;;  %v827_v20 = vpop.f32.mrf.mxu0 }
 0x1ce   : > { %vm832_vm15 = vcmp.ge.f32.partialorder %v813_v52, 0.0  ;;  %v837_v21 = vmul.f32 0.1, %v813_v52 }
 0x1cf   : > { %v865_v22 = vsel %vm683_vm1, %v846_v15, %v853_v18 }
 0x1d0   : > { %869 = vst [vmem:[%s1571_s10 + $0x8] sm:$0x3] %v865_v22  ;;  %v842_v24 = vsel %vm832_vm15, %v813_v52, %v837_v21 }
 0x1d1   : > { %v845_v19 = vpack.c.bf16 %v842_v24, %v841_v23 }
 0x1d3   : > { %v851_v25 = vrot.slane %v845_v19, 4  ;;  %v852_v26 = vrot.slane %v845_v19, 6  ;;  %v814_v27 = vpop.f32.mrf.mxu3  ;;  %877 = sbr.rel (!%p1335_p3) target bundleno = 502 (0x1f6), region = 44 }
 0x1d5   : > { %v860_v29 = vsel %vm857_vm0, %v851_v25, %v852_v26 }
 0x1d6   : > { %v862_v30 = vsel %vm861_vm2, %v856_v28, %v860_v29 }
 0x1d7   : > { %868 = vst [vmem:[%s1571_s10] sm:$0xff] %v862_v30 }
 0x1d8   : > { %s1690_s13 = smov (!%p880_p5, %s879_s13), 5 }
 0x1d9   : > { %s1024_s14 = sshll.u32 %s1690_s13, 1 }
 0x1da   : > { %s883_s15 = ssub.s32 10, %s1024_s14 }
 0x1db   : > { %s884_s17 = sshll.u32 %s883_s15, 4 }
 0x1dc   : > { %885 = vsyncadd %s1578_s12, %s884_s17  ;;  %s1035_s16 = smul.u32 6, %s1232_s22  ;;  %s893_s27 = sshll.u32 %s1571_s10, 4  ;;  %s1598_s27 = int_to_ptr.vmem [resolvable:$true] %s893_s27 }
 0x1dd   : > { %p1589_p6 = scmp.ne.s32.totalorder %s1024_s14, 0  ;;  %s1028_s9 = sshll.u32 %s1690_s13, 5 }
 0x1de   : > { %s888_s30 = sadd.s32 %s1035_s16, %s1368_s26  ;;  %s1139_s1 = sshra.s32 %s1598_s27, 4  ;;  %s1140_s1 = int_to_ptr.vmem [resolvable:$true] %s1139_s1 }
 0x1df   : > { %s1026_s8 = sshll.u32 %s888_s30, 1  ;;  %s1141_s22 = sshrl.u32 %s1028_s9, 4 }
 0x1e0   : > { %s890_s15 = scalar_lea.hbm %s1652_s5, %s1026_s8  ;;  %s1146_s10 = scalar_lea.vmem %s1140_s1, %s1141_s22 }
 0x1e1   : > { %s895_s17 = sshll.u32 %s890_s15, 4  ;;  %p1147_p3 = scmp.ne.s32.totalorder %s1140_s1, %s1146_s10  ;;  %s896_s17 = int_to_ptr.hbm [resolvable:$true] %s895_s17 }
 0x1e2   : > { %s1253_s26 = smov [#allocation2]  }
 0x1e3   : > { %p1148_p7 = pnand %p1147_p3, %p1589_p6  ;;  %s1150_s14 = scalar_lea.vmem %s1253_s26, 20 }
 0x1e4   : > { %p1152_p10 = scmp.lt.s32.totalorder %s1150_s14, %s1146_s10 }
 0x1e5   : > { %p1149_p9 = pneg %p1148_p7 }
 0x1e7   : > { %p1154_p11 = pnand %p1152_p10, %p1149_p9 }
 0x1e9   : > { %1157 = shalt.err (!%p1154_p11)
}
 0x1ea   : > { %s1158_s0 = sshra.s32 %s896_s17, 4  ;;  %s1169_s1 = scalar_lea.hbm %s1652_s5, 24  ;;  %s1159_s0 = int_to_ptr.hbm [resolvable:$true] %s1158_s0 }
 0x1eb   : > { %s1165_s16 = scalar_lea.hbm %s1159_s0, %s1141_s22  ;;  %p1170_p1 = scmp.lt.s32.totalorder %s1159_s0, %s1652_s5 }
 0x1ec   : > { %p1166_p12 = scmp.ne.s32.totalorder %s1159_s0, %s1165_s16  ;;  %p1171_p2 = scmp.lt.s32.totalorder %s1169_s1, %s1165_s16 }
 0x1ee   : > { %p1167_p13 = pnand %p1166_p12, %p1589_p6  ;;  %p1172_p4 = por %p1171_p2, %p1170_p1 }
 0x1f0   : > { %p1168_p0 = pneg %p1167_p13 }
 0x1f2   : > { %p1173_p5 = pnand %p1172_p4, %p1168_p0 }
 0x1f4   : > { %1176 = shalt.err (!%p1173_p5)
}
 0x1f5   : > { %898 = dma.vmem_to_hbm [thread:$0]  (%p1589_p6), %s1598_s27, %s1028_s9, %s896_s17, %s1578_s12  }
 0x1f6 PF: > { %p1041_p3 = scmp.ge.s32.totalorder %s1244_s25, 2  ;;  %s907_s22 = sand.u32 1, %s1216_s18  }
 0x1f7   : > { %s908_s10 = scalar_lea.sflag [#allocation3], %s907_s22 }
 0x1f8   : > { %p1038_p7 = pnand %p1041_p3, %p1344_p8 }
 0x1fa   : > { %p1039_p9 = pneg %p1038_p7 }
 0x1fc   : > { %1211 = dma.done.wait (%p1039_p9), %s908_s10, 160  }
 0x1fd   : > { %1213 = vsyncadd (%p1039_p9), %s908_s10, 4294967136  ;;  %s18_s25 = sadd.s32 1, %s1244_s25   ;;  %s1668_s18 = smov %s1220_s19 }
 0x1fe   : > { %p15_p10 = scmp.ge.s32.totalorder %s18_s25, 6   ;;  %s1669_s19 = smov %s1224_s20 }
 0x1ff   : > { %s1670_s20 = smov %s1353_s11  ;;  %s1671_s21 = smov %s1236_s23 }
 0x200   : > { %s1672_s22 = smov %s1240_s24  ;;  %s1673_s23 = smov %s1676_s28 }
 0x201   : > { %s1674_s24 = smov %s1680_s29  ;;  %17 = sbr.rel (!%p15_p10) target bundleno = 8 (0x8), region = 81 }
 0x206   :  { %914 = vsyncpa [#allocation3], 1 }
 0x207   :  { %916 = vsyncpa [#allocation3 + $0x1], 1 }

</bundles_post_ra>
